<compile_context>
chip_gen: v5e
topology: v5e:2x2
jax: 0.10.0
libtpu: 0.0.40
codegen_flags: <defaults>
</compile_context>

<pallas_src>
import jax
import jax.numpy as jnp
from jax.experimental import pallas as pl
from jax.experimental.pallas import tpu as pltpu


def simple_nn_kernel(xt_ref, w1_ref, b1_ref, w2_ref, b2_ref, o_ref):
    # xt_ref: (In, TB)  -- batch in the lane dim
    # w1_ref: (H, In)   -- torch nn.Linear.weight layout
    # b1_ref: (H, 1), w2_ref: (H, 1), b2_ref: (1, 1)
    # o_ref : (1, TB)   -- lane-dense output tile
    # Hidden layer on the MXU: (H, In) @ (In, TB) -> (H, TB).
    h = jnp.dot(w1_ref[...], xt_ref[...], preferred_element_type=jnp.float32)
    h = jnp.maximum(h + b1_ref[...], 0.0)  # bias broadcast along lanes + ReLU (VPU)
    # Output layer (K=H=5, N=1): VPU multiply + sublane reduce (XLU) instead of an
    # MXU pass that would use 1 useful column out of 128/256.
    out = jnp.sum(h * w2_ref[...], axis=0, keepdims=True) + b2_ref[...]  # (1, TB)
    o_ref[...] = out.astype(o_ref.dtype)


def simple_nn_forward(x, w1, b1, w2, b2, *, tb=1024):
    """Forward pass matching the PyTorch module.

    x:  [B, In]
    w1: [H, In]   (nn.Linear.weight layout)
    b1: [H]
    w2: [Out, H]  with Out == 1
    b2: [Out]
    returns: [B, Out]
    """
    B, In = x.shape
    H = w1.shape[0]
    Out = w2.shape[0]
    assert Out == 1, "kernel specialized for output_size == 1"

    # Transposed, lane-dense layout (wrapper-side layout plumbing only).
    xt = x.T                              # (In, B)
    b1c = b1.reshape(H, 1)                # (H, 1)
    w2c = w2.T.reshape(H, 1)              # (H, 1)
    b2c = b2.reshape(1, 1)                # (1, 1)

    if B > tb:
        n_tiles = pl.cdiv(B, tb)
        Bp = n_tiles * tb
        if Bp != B:
            xt = jnp.pad(xt, ((0, 0), (0, Bp - B)))
    else:
        # Single tile: block shape == full array dims, no (8,128) padding needed.
        tb = B
        Bp = B
        n_tiles = 1

    cost = pl.CostEstimate(
        flops=2 * Bp * In * H + 2 * Bp * H,
        transcendentals=0,
        bytes_accessed=4 * (In * Bp + H * In + H + H + 1 + Bp),
    )

    out_t = pl.pallas_call(
        simple_nn_kernel,
        out_shape=jax.ShapeDtypeStruct((1, Bp), jnp.float32),
        grid=(n_tiles,),
        in_specs=[
            pl.BlockSpec((In, tb), lambda i: (0, i)),   # batch-tiled activations
            pl.BlockSpec((H, In), lambda i: (0, 0)),    # VMEM-resident weights
            pl.BlockSpec((H, 1), lambda i: (0, 0)),
            pl.BlockSpec((H, 1), lambda i: (0, 0)),
            pl.BlockSpec((1, 1), lambda i: (0, 0)),
        ],
        out_specs=pl.BlockSpec((1, tb), lambda i: (0, i)),  # lane-dense output
        compiler_params=pltpu.CompilerParams(
            dimension_semantics=("parallel",),  # shards batch tiles across TCs on v7x
        ),
        cost_estimate=cost,
    )(xt, w1, b1c, w2c, b2c)

    return out_t[:, :B].T                 # (B, 1)


def reference_forward(x, w1, b1, w2, b2):
    h = jnp.maximum(x @ w1.T + b1, 0.0)
    return h @ w2.T + b2


if __name__ == "__main__":
    input_size = 10
    hidden_size = 5
    output_size = 1
    batch = 32

    key = jax.random.PRNGKey(0)
    k_x, k_w1, k_b1, k_w2, k_b2 = jax.random.split(key, 5)

    # Deterministic inputs + PyTorch-like uniform init, in nn.Linear layout.
    x = jax.random.normal(k_x, (batch, input_size), dtype=jnp.float32)
    bound1 = 1.0 / (input_size ** 0.5)
    w1 = jax.random.uniform(k_w1, (hidden_size, input_size), jnp.float32,
                            minval=-bound1, maxval=bound1)
    b1 = jax.random.uniform(k_b1, (hidden_size,), jnp.float32,
                            minval=-bound1, maxval=bound1)
    bound2 = 1.0 / (hidden_size ** 0.5)
    w2 = jax.random.uniform(k_w2, (output_size, hidden_size), jnp.float32,
                            minval=-bound2, maxval=bound2)
    b2 = jax.random.uniform(k_b2, (output_size,), jnp.float32,
                            minval=-bound2, maxval=bound2)

    # Module-sized case (B=32): single grid step, full-array blocks.
    out = jax.block_until_ready(simple_nn_forward(x, w1, b1, w2, b2))
    ref = reference_forward(x, w1, b1, w2, b2)
    assert out.shape == (batch, output_size)
    assert jnp.allclose(out, ref, atol=1e-5, rtol=1e-5)

    # Larger, non-multiple batch: exercises the tiled/padded parallel-grid path.
    big_b = 1280
    xb = jax.random.normal(jax.random.PRNGKey(1), (big_b, input_size), jnp.float32)
    out_b = jax.block_until_ready(simple_nn_forward(xb, w1, b1, w2, b2, tb=512))
    ref_b = reference_forward(xb, w1, b1, w2, b2)
    assert out_b.shape == (big_b, output_size)
    assert jnp.allclose(out_b, ref_b, atol=1e-5, rtol=1e-5)

    print("KERNEL_OK")
</pallas_src>

<mosaic_0001>
module attributes {stable_mosaic.version = 11 : i64} {
  func.func @simple_nn_kernel(%arg0: i32, %arg1: memref<10x32xf32, #tpu.memory_space<vmem>>, %arg2: memref<5x10xf32, #tpu.memory_space<vmem>>, %arg3: memref<5x1xf32, #tpu.memory_space<vmem>>, %arg4: memref<5x1xf32, #tpu.memory_space<vmem>>, %arg5: memref<1x1xf32, #tpu.memory_space<vmem>>, %arg6: memref<1x32xf32, #tpu.memory_space<vmem>>) attributes {dimension_semantics = [#tpu.dimension_semantics<parallel>], iteration_bounds = array<i64: 1>, scalar_prefetch = 0 : i64, scratch_operands = 0 : i64, tpu.core_type = #tpu.core_type<tc>, window_params = [{transform_indices = @transform_0, window_bounds = array<i64: 10, 32>}, {pipeline_mode = #tpu.pipeline_mode<synchronous>, transform_indices = @transform_1, window_bounds = array<i64: 5, 10>}, {pipeline_mode = #tpu.pipeline_mode<synchronous>, transform_indices = @transform_2, window_bounds = array<i64: 5, 1>}, {pipeline_mode = #tpu.pipeline_mode<synchronous>, transform_indices = @transform_3, window_bounds = array<i64: 5, 1>}, {pipeline_mode = #tpu.pipeline_mode<synchronous>, transform_indices = @transform_4, window_bounds = array<i64: 1, 1>}, {transform_indices = @transform_5, window_bounds = array<i64: 1, 32>}]} {
    %c0 = arith.constant 0 : index
    %c0_0 = arith.constant 0 : index
    %0 = vector.load %arg2[%c0, %c0_0] : memref<5x10xf32, #tpu.memory_space<vmem>>, vector<5x10xf32>
    %c0_1 = arith.constant 0 : index
    %c0_2 = arith.constant 0 : index
    %1 = vector.load %arg1[%c0_1, %c0_2] : memref<10x32xf32, #tpu.memory_space<vmem>>, vector<10x32xf32>
    %cst = arith.constant dense<0.000000e+00> : vector<5x32xf32>
    %2 = tpu.matmul %0, %1, %cst {dimension_numbers = #tpu.dot_dimension_numbers<[1], [0], [0], [1], [0, 0, 1, 1], [], []>} : vector<5x10xf32>, vector<10x32xf32>, vector<5x32xf32> -> vector<5x32xf32>
    %c0_3 = arith.constant 0 : index
    %c0_4 = arith.constant 0 : index
    %3 = vector.load %arg3[%c0_3, %c0_4] : memref<5x1xf32, #tpu.memory_space<vmem>>, vector<5x1xf32>
    %4 = vector.broadcast %3 : vector<5x1xf32> to vector<5x32xf32>
    %5 = arith.addf %2, %4 : vector<5x32xf32>
    %cst_5 = arith.constant 0.000000e+00 : f32
    %6 = vector.broadcast %cst_5 : f32 to vector<5x32xf32>
    %7 = arith.maximumf %5, %6 : vector<5x32xf32>
    %c0_6 = arith.constant 0 : index
    %c0_7 = arith.constant 0 : index
    %8 = vector.load %arg4[%c0_6, %c0_7] : memref<5x1xf32, #tpu.memory_space<vmem>>, vector<5x1xf32>
    %9 = vector.broadcast %8 : vector<5x1xf32> to vector<5x32xf32>
    %10 = arith.mulf %7, %9 : vector<5x32xf32>
    %cst_8 = arith.constant dense<0.000000e+00> : vector<32xf32>
    %11 = vector.multi_reduction <add>, %10, %cst_8 [0] : vector<5x32xf32> to vector<32xf32>
    %12 = vector.shape_cast %11 : vector<32xf32> to vector<1x32xf32>
    %c0_9 = arith.constant 0 : index
    %c0_10 = arith.constant 0 : index
    %13 = vector.load %arg5[%c0_9, %c0_10] : memref<1x1xf32, #tpu.memory_space<vmem>>, vector<1x1xf32>
    %14 = vector.broadcast %13 : vector<1x1xf32> to vector<1x32xf32>
    %15 = arith.addf %12, %14 : vector<1x32xf32>
    %c0_11 = arith.constant 0 : index
    %c0_12 = arith.constant 0 : index
    %16 = vector.load %arg6[%c0_11, %c0_12] : memref<1x32xf32, #tpu.memory_space<vmem>>, vector<1x32xf32>
    tpu.vector_store %arg6[%c0_11, %c0_12], %15 {strides = array<i32>} : memref<1x32xf32, #tpu.memory_space<vmem>>, vector<1x32xf32>,
    return
  }
  func.func @transform_0(%arg0: i32) -> (i32, i32) {
    %c0_i32 = arith.constant 0 : i32
    %c0_i32_0 = arith.constant 0 : i32
    return %c0_i32, %arg0 : i32, i32
  }
  func.func @transform_1(%arg0: i32) -> (i32, i32) {
    %c0_i32 = arith.constant 0 : i32
    %c0_i32_0 = arith.constant 0 : i32
    %c0_i32_1 = arith.constant 0 : i32
    return %c0_i32, %c0_i32_0 : i32, i32
  }
  func.func @transform_2(%arg0: i32) -> (i32, i32) {
    %c0_i32 = arith.constant 0 : i32
    %c0_i32_0 = arith.constant 0 : i32
    %c0_i32_1 = arith.constant 0 : i32
    return %c0_i32, %c0_i32_0 : i32, i32
  }
  func.func @transform_3(%arg0: i32) -> (i32, i32) {
    %c0_i32 = arith.constant 0 : i32
    %c0_i32_0 = arith.constant 0 : i32
    %c0_i32_1 = arith.constant 0 : i32
    return %c0_i32, %c0_i32_0 : i32, i32
  }
  func.func @transform_4(%arg0: i32) -> (i32, i32) {
    %c0_i32 = arith.constant 0 : i32
    %c0_i32_0 = arith.constant 0 : i32
    %c0_i32_1 = arith.constant 0 : i32
    return %c0_i32, %c0_i32_0 : i32, i32
  }
  func.func @transform_5(%arg0: i32) -> (i32, i32) {
    %c0_i32 = arith.constant 0 : i32
    %c0_i32_0 = arith.constant 0 : i32
    return %c0_i32, %arg0 : i32, i32
  }
}

</mosaic_0001>

<bundles_post_ra>
// kernel: tpu_custom_call.1
= control target key start
LH: loop header
LB: loop body
LE: loop exit
PB: predicated region body
PF: predicated region fallthrough
CT: control target
= control target key end

     0   :  { %s230_s0 = inlined_call_operand.vmem [shape: f32[10,32], index: 0, kind: input, shape index: {}]   ;;  %s231_s1 = inlined_call_operand.hbm [shape: f32[5,10], index: 1, kind: input, shape index: {}]   ;;  %s232_s2 = inlined_call_operand.vmem [shape: f32[5,1], index: 2, kind: input, shape index: {}]   ;;  %s233_s3 = inlined_call_operand.vmem [shape: f32[5,1], index: 3, kind: input, shape index: {}]   ;;  %s234_s4 = inlined_call_operand.<no memory space> [shape: f32[1,1], index: 4, kind: input, shape index: {}]   ;;  %s235_s5 = inlined_call_operand.hbm [shape: f32[1,32], index: 5, kind: output, shape index: {}]  }
   0x1   :  { %v10_v0 = vstv %s234_s4 }
   0x2   :  { %11 = vst [vmem:[#allocation2] sm:$0x1] %v10_v0 }
   0x3   :  { %12 = vsyncpa [#allocation4], 0 }
   0x4   :  { %13 = vsyncpa [#allocation5], 0  ;;  %s21_s22 = sshll.u32 %s231_s1, 4  ;;  %s176_s23 = smov [#allocation3]   ;;  %s22_s22 = int_to_ptr.hbm [resolvable:$true] %s21_s22 }
   0x5   :  { %s23_s24 = sshll.u32 %s176_s23, 4  ;;  %s24_s24 = int_to_ptr.vmem [resolvable:$true] %s23_s24 }
   0x6   :  { %26 = dma.hbm_to_vmem [thread:$0]  %s22_s22, 128, %s24_s24, [#allocation4]  }
   0x7   :  { %172 = dma.done.wait [#allocation4], 128  }
   0x8   :  { %173 = vsyncadd [#allocation4], 4294967168  ;;  %v177_v1 = vmov 0   ;;  %vm50_vm0 = vcmask 1041408   ;;  %v39_v2 = vld [vmem:[%s230_s0 + $0x8] sm:$0x3] }
   0x9   :  { %122 = vset.pattern.permute.xlu0 %v177_v1  ;;  %123 = vset.pattern.permute.xlu1 %v177_v1  ;;  %v40_v3 = vld [vmem:[%s232_s2] sm:$0x1f]  ;;  %vm46_vm1 = vcmask 80896   ;;  %vm82_vm2 = vcmask 258048   ;;  %s107_s7 = sshll.u32 %s235_s5, 4  ;;  %vm98_vm3 = vcmask 253952   ;;  %s108_s7 = int_to_ptr.hbm [resolvable:$true] %s107_s7 }
   0xa   :  { %v38_v4 = vld [vmem:[%s230_s0] sm:$0xff]  ;;  %117 = vmatpush.msk.msra.mxu0 %vm50_vm0, %v39_v2  ;;  %43 = vperm.xlu0 %122, %v40_v3   ;;  %s178_s0 = smov [#allocation6]  }
   0xb   :  { %v37_v5 = vld [vmem:[#allocation3] sm:$0x1f]  ;;  %v90_v6 = vld [vmem:[#allocation2] sm:$0x1]  ;;  %s105_s2 = sshll.u32 %s178_s0, 4  ;;  %s106_s2 = int_to_ptr.vmem [resolvable:$true] %s105_s2 }
   0xc   :  { %93 = vperm.xlu1 %123, %v90_v6   ;;  %69 = vmatpush.msra.mxu0 %v38_v4  ;;  %v75_v7 = vld [vmem:[%s233_s3] sm:$0x1f] }
   0xd   :  { %118 = vmatmul.msk.f32.vlgmr.msra.gmra.mxu0 %vm46_vm1, %v37_v5 }
  0x12   :  { %78 = vperm.xlu0 %122, %v75_v7  }
  0x7c   :  { %v44_v8 = vpop.permute.xlu0 %43 }
  0x7e   :  { %v94_v18 = vpop.permute.xlu1 %93 }
  0x7f   :  { %v96_v21 = vperm.slane %v94_v18, 0 }
  0x84   :  { %v79_v12 = vpop.permute.xlu0 %78 }
  0x8a   :  { %v71_v9 = vpop.f32.mrf.mxu0 }
  0x8b   :  { %v72_v10 = vadd.f32 %v71_v9, %v44_v8 }
  0x8d   :  { %v74_v11 = vmax.f32 %v72_v10, 0.0 }
  0x8f   :  { %v81_v13 = vmul.f32 %v79_v12, %v74_v11 }
  0x91   :  { %v83_v14 = vsel %vm82_vm2, %v81_v13, 0.0 }
  0x92   :  { %v84_v15 = vrot.slane %v83_v14, 4 }
  0x94   :  { %v85_v16 = vadd.f32 %v84_v15, %v83_v14 }
  0x96   :  { %v86_v17 = vrot.slane %v85_v16, 2 }
  0x98   :  { %v87_v19 = vadd.f32 %v86_v17, %v85_v16 }
  0x9a   :  { %v88_v20 = vrot.slane %v87_v19, 1 }
  0x9c   :  { %v89_v22 = vadd.f32 %v88_v20, %v87_v19 }
  0x9e   :  { %v97_v23 = vadd.f32 %v96_v21, %v89_v22 }
  0xa0   :  { %99 = vst.msk [vmem:[#allocation6] sm:$0x1] %vm98_vm3, %v97_v23 }
  0xa1   :  { %110 = dma.vmem_to_hbm [thread:$0]  %s106_s2, 16, %s108_s7, [#allocation5]  }
  0xa2   :  { %174 = dma.done.wait [#allocation5], 16  }
  0xa3   :  { %175 = vsyncadd [#allocation5], 4294967280 }
  0xa4   :  { %115 = vsyncpa [#allocation4], 1 }
  0xa5   :  { %116 = vsyncpa [#allocation5], 1 }

</bundles_post_ra>
